<compile_context>
chip_gen: v7x
topology: tpu7x:2x2x1
jax: 0.10.0
libtpu: 0.0.40
codegen_flags: <defaults>
</compile_context>

<pallas_src>
import functools

import jax
import jax.numpy as jnp
from jax.experimental import pallas as pl
from jax.experimental.pallas import tpu as pltpu


VMEM_LIMIT = 48 * 1024 * 1024  # <= 64 MiB physical VMEM on v7x


def _round_up(x, m):
    return ((x + m - 1) // m) * m


def _largest_divisor_leq(n, cap):
    for d in range(min(n, cap), 0, -1):
        if n % d == 0:
            return d
    return 1


def _largest_tile(n, base, cap):
    """Largest multiple of `base` that divides n and is <= cap, else None."""
    best = None
    d = base
    while d <= min(n, cap):
        if n % d == 0:
            best = d
        d += base
    return best


# ----------------------------------------------------------------------------
# Conv 3x3 (stride 1, pad 1) + ReLU  ==  (M, 9*Cin) @ (9*Cin, Cout) matmul
# ----------------------------------------------------------------------------
def _conv_matmul_relu_kernel(x_ref, w_ref, b_ref, o_ref):
    # x_ref: (TM, Kp) bf16, w_ref: (Kp, Cop) bf16, b_ref: (1, Cop) f32
    acc = jnp.dot(x_ref[...], w_ref[...], preferred_element_type=jnp.float32)
    o_ref[...] = jnp.maximum(acc + b_ref[...], 0.0).astype(o_ref.dtype)


def conv3x3_relu(x_nhwc, w, b):
    """x: (N,H,W,Cin) bf16, w: (3,3,Cin,Cout) bf16, b: (Cout,) f32."""
    N, H, W, Cin = x_nhwc.shape
    Cout = w.shape[-1]
    M = N * H * W
    K = 9 * Cin
    Kp = _round_up(K, 8)            # e.g. 27 -> 32 on the first layer
    Cop = _round_up(Cout, 128)      # lane-dense output stores
    tm = 512 if M >= 4096 else 256  # M-tile (multiple of 8)
    Mp = _round_up(M, tm)

    # glue: im2col — fuse the 9 taps on the channel axis -> one K=9*Cin dot
    xp = jnp.pad(x_nhwc, ((0, 0), (1, 1), (1, 1), (0, 0)))
    cols = jnp.concatenate(
        [xp[:, kh:kh + H, kw:kw + W, :] for kh in range(3) for kw in range(3)],
        axis=-1)                                        # (N, H, W, 9*Cin)
    x_cols = cols.reshape(M, K)
    if Mp != M or Kp != K:
        x_cols = jnp.pad(x_cols, ((0, Mp - M), (0, Kp - K)))

    w2 = w.reshape(K, Cout)                             # matches tap order
    if Kp != K or Cop != Cout:
        w2 = jnp.pad(w2, ((0, Kp - K), (0, Cop - Cout)))
    b2 = jnp.pad(b, (0, Cop - Cout)).reshape(1, Cop).astype(jnp.float32)

    out = pl.pallas_call(
        _conv_matmul_relu_kernel,
        out_shape=jax.ShapeDtypeStruct((Mp, Cop), x_nhwc.dtype),
        grid_spec=pltpu.PrefetchScalarGridSpec(
            num_scalar_prefetch=0,
            grid=(Mp // tm,),
            in_specs=[
                pl.BlockSpec((tm, Kp), lambda i: (i, 0)),
                pl.BlockSpec((Kp, Cop), lambda i: (0, 0)),   # weight resident
                pl.BlockSpec((1, Cop), lambda i: (0, 0)),
            ],
            out_specs=pl.BlockSpec((tm, Cop), lambda i: (i, 0)),
        ),
        compiler_params=pltpu.CompilerParams(
            dimension_semantics=("parallel",),
            vmem_limit_bytes=VMEM_LIMIT),
    )(x_cols, w2, b2)
    return out[:M, :Cout].reshape(N, H, W, Cout)


# ----------------------------------------------------------------------------
# MaxPool 2x2, stride 2 — elementwise maxima on full tiles, no transpose glue
# ----------------------------------------------------------------------------
def _maxpool_kernel(x_ref, o_ref):
    # x_ref: (th, 2, Wo, 2*C), o_ref: (th, Wo, C)
    c = o_ref.shape[-1]
    x = x_ref[...]
    r = jnp.maximum(x[:, 0, :, :], x[:, 1, :, :])        # rows of the window
    o_ref[...] = jnp.maximum(r[..., :c], r[..., c:])     # cols of the window


def maxpool2x2(x_nhwc):
    N, H, W, C = x_nhwc.shape
    Ho, Wo = H // 2, W // 2
    # free (row-major compatible) reshape: window rows/cols become axes
    xr = x_nhwc.reshape(N * Ho, 2, Wo, 2 * C)
    R = N * Ho
    th = _largest_divisor_leq(R, 32)

    out = pl.pallas_call(
        _maxpool_kernel,
        out_shape=jax.ShapeDtypeStruct((R, Wo, C), x_nhwc.dtype),
        grid_spec=pltpu.PrefetchScalarGridSpec(
            num_scalar_prefetch=0,
            grid=(R // th,),
            in_specs=[pl.BlockSpec((th, 2, Wo, 2 * C), lambda r: (r, 0, 0, 0))],
            out_specs=pl.BlockSpec((th, Wo, C), lambda r: (r, 0, 0)),
        ),
        compiler_params=pltpu.CompilerParams(
            dimension_semantics=("parallel",),
            vmem_limit_bytes=VMEM_LIMIT),
    )(xr)
    return out.reshape(N, Ho, Wo, C)


# ----------------------------------------------------------------------------
# Linear (+ optional fused ReLU):  y = x @ W^T + b   (K-tiled accumulation)
# ----------------------------------------------------------------------------
def _linear_kernel(x_ref, w_ref, b_ref, o_ref, acc_ref, *, relu):
    k = pl.program_id(1)

    @pl.when(k == 0)
    def _():
        acc_ref[...] = jnp.zeros_like(acc_ref)

    acc_ref[...] += jnp.dot(x_ref[...], w_ref[...],
                            preferred_element_type=jnp.float32)

    @pl.when(k == pl.num_programs(1) - 1)
    def _():
        y = acc_ref[...] + b_ref[...]
        if relu:
            y = jnp.maximum(y, 0.0)
        o_ref[...] = y.astype(o_ref.dtype)


def linear(x, w_t, b, relu=False, out_dtype=None):
    """x: (N,K) bf16 (N multiple of 8), w_t: (K,Out) bf16, b: (Out,) f32."""
    N, K = x.shape
    Out = w_t.shape[1]
    out_dtype = out_dtype if out_dtype is not None else x.dtype

    Outp = _round_up(Out, 128)                      # lane-dense output
    if Outp != Out:
        w_t = jnp.pad(w_t, ((0, 0), (0, Outp - Out)))
        b = jnp.pad(b, (0, Outp - Out))
    b2 = b.reshape(1, Outp).astype(jnp.float32)

    # 256-aligned tiles where possible (v6e/v7x MXU), bounded for VMEM
    tk = _largest_tile(K, 256, 2048) or _largest_tile(K, 128, 2048) or K
    to = _largest_tile(Outp, 256, 512) or _largest_tile(Outp, 128, 512) or Outp

    grid = (Outp // to, K // tk)
    out = pl.pallas_call(
        functools.partial(_linear_kernel, relu=relu),
        out_shape=jax.ShapeDtypeStruct((N, Outp), out_dtype),
        grid_spec=pltpu.PrefetchScalarGridSpec(
            num_scalar_prefetch=0,
            grid=grid,
            in_specs=[
                pl.BlockSpec((N, tk), lambda j, k: (0, k)),
                pl.BlockSpec((tk, to), lambda j, k: (k, j)),
                pl.BlockSpec((1, to), lambda j, k: (0, j)),
            ],
            out_specs=pl.BlockSpec((N, to), lambda j, k: (0, j)),
            scratch_shapes=[pltpu.VMEM((N, to), jnp.float32)],
        ),
        compiler_params=pltpu.CompilerParams(
            dimension_semantics=("parallel", "arbitrary"),
            vmem_limit_bytes=VMEM_LIMIT),
    )(x, w_t, b2)
    return out[:, :Out] if Outp != Out else out


# ----------------------------------------------------------------------------
# VGG module: parameter init (matches _initialize_weights) + forward
# ----------------------------------------------------------------------------
def init_vgg_params(key, cfg, in_channels, num_classes):
    features = []
    c = in_channels
    for v in cfg:
        if v == 'M':
            features.append(("maxpool", None))
        else:
            key, kw = jax.random.split(key)
            fan_out = v * 3 * 3                          # kaiming_normal fan_out
            std = (2.0 / fan_out) ** 0.5
            w = (jax.random.normal(kw, (3, 3, c, v), jnp.float32) * std
                 ).astype(jnp.bfloat16)
            b = jnp.zeros((v,), jnp.float32)             # constant_ 0
            features.append(("conv", (w, b)))
            c = v

    classifier = []
    dims = [(512 * 7 * 7, 4096, True),
            (4096, 4096, True),
            (4096, num_classes, False)]
    for (k_in, k_out, relu) in dims:
        key, kw = jax.random.split(key)
        # nn.init.normal_(std=0.01); generated directly in (in, out) layout
        w_t = (jax.random.normal(kw, (k_in, k_out), jnp.float32) * 0.01
               ).astype(jnp.bfloat16)
        b = jnp.zeros((k_out,), jnp.float32)
        classifier.append((w_t, b, relu))
    return {"features": features, "classifier": classifier}


def vgg_forward(params, x_nchw):
    # NCHW -> NHWC for the Pallas conv/pool kernels; bf16 activations
    x = jnp.transpose(x_nchw, (0, 2, 3, 1)).astype(jnp.bfloat16)
    for kind, p in params["features"]:
        if kind == "maxpool":
            x = maxpool2x2(x)
        else:
            w, b = p
            x = conv3x3_relu(x, w, b)         # Conv2d(3x3, pad=1) + ReLU fused
    # torch.flatten(x, 1) on NCHW -> transpose back before flattening
    N = x.shape[0]
    x = jnp.transpose(x, (0, 3, 1, 2)).reshape(N, -1)
    assert x.shape[1] == 512 * 7 * 7, "feature extractor must yield 512*7*7"

    # pad batch rows to a multiple of 8 (sublane-dense matmul tiles)
    Np = _round_up(N, 8)
    if Np != N:
        x = jnp.pad(x, ((0, Np - N), (0, 0)))

    # classifier: Linear+ReLU, Dropout, Linear+ReLU, Dropout, Linear
    # TODO(synk): nn.Dropout(p=0.5) is identity in eval mode; training-mode
    # stochastic dropout is not implemented here.
    n_layers = len(params["classifier"])
    for idx, (w_t, b, relu) in enumerate(params["classifier"]):
        last = idx == n_layers - 1
        x = linear(x, w_t, b, relu=relu,
                   out_dtype=jnp.float32 if last else jnp.bfloat16)
    return x[:N]


if __name__ == "__main__":
    # Small, deterministic configuration consistent with the module:
    # feature extractor must end with 512 channels at 7x7 spatial
    # (classifier in_features is hard-coded to 512*7*7).
    cfg = [8, 8, 'M', 512]        # conv3->8, conv8->8, maxpool, conv8->512
    in_channels = 3
    num_classes = 100
    batch = 2
    spatial = 14                  # one 'M' pool: 14 -> 7

    key = jax.random.PRNGKey(0)
    key, xk = jax.random.split(key)
    x = jax.random.normal(xk, (batch, in_channels, spatial, spatial),
                          jnp.float32)

    params = init_vgg_params(key, cfg, in_channels, num_classes)

    out = vgg_forward(params, x)
    out = jax.block_until_ready(out)

    assert out.shape == (batch, num_classes), out.shape
    assert out.dtype == jnp.float32
    assert bool(jnp.all(jnp.isfinite(out)))
    print("KERNEL_OK")
</pallas_src>

<mosaic_0001>
module attributes {stable_mosaic.version = 11 : i64} {
  func.func @_conv_matmul_relu_kernel(%arg0: i32, %arg1: memref<256x32xbf16, #tpu.memory_space<vmem>>, %arg2: memref<32x128xbf16, #tpu.memory_space<vmem>>, %arg3: memref<1x128xf32, #tpu.memory_space<vmem>>, %arg4: memref<256x128xbf16, #tpu.memory_space<vmem>>) attributes {dimension_semantics = [#tpu.dimension_semantics<parallel>], iteration_bounds = array<i64: 2>, scalar_prefetch = 0 : i64, scratch_operands = 0 : i64, tpu.core_type = #tpu.core_type<tc>, window_params = [{transform_indices = @transform_0, window_bounds = array<i64: 256, 32>}, {pipeline_mode = #tpu.pipeline_mode<synchronous>, transform_indices = @transform_1, window_bounds = array<i64: 32, 128>}, {pipeline_mode = #tpu.pipeline_mode<synchronous>, transform_indices = @transform_2, window_bounds = array<i64: 1, 128>}, {transform_indices = @transform_3, window_bounds = array<i64: 256, 128>}]} {
    %c0 = arith.constant 0 : index
    %c0_0 = arith.constant 0 : index
    %0 = vector.load %arg1[%c0, %c0_0] : memref<256x32xbf16, #tpu.memory_space<vmem>>, vector<256x32xbf16>
    %c0_1 = arith.constant 0 : index
    %c0_2 = arith.constant 0 : index
    %1 = vector.load %arg2[%c0_1, %c0_2] : memref<32x128xbf16, #tpu.memory_space<vmem>>, vector<32x128xbf16>
    %cst = arith.constant dense<0.000000e+00> : vector<256x128xf32>
    %2 = tpu.matmul %0, %1, %cst {dimension_numbers = #tpu.dot_dimension_numbers<[1], [0], [0], [1], [0, 0, 1, 1], [], []>} : vector<256x32xbf16>, vector<32x128xbf16>, vector<256x128xf32> -> vector<256x128xf32>
    %c0_3 = arith.constant 0 : index
    %c0_4 = arith.constant 0 : index
    %3 = vector.load %arg3[%c0_3, %c0_4] : memref<1x128xf32, #tpu.memory_space<vmem>>, vector<1x128xf32>
    %4 = vector.broadcast %3 : vector<1x128xf32> to vector<256x128xf32>
    %5 = arith.addf %2, %4 : vector<256x128xf32>
    %cst_5 = arith.constant 0.000000e+00 : f32
    %6 = vector.broadcast %cst_5 : f32 to vector<256x128xf32>
    %7 = arith.maximumf %5, %6 : vector<256x128xf32>
    %8 = arith.truncf %7 : vector<256x128xf32> to vector<256x128xbf16>
    %c0_6 = arith.constant 0 : index
    %c0_7 = arith.constant 0 : index
    %9 = vector.load %arg4[%c0_6, %c0_7] : memref<256x128xbf16, #tpu.memory_space<vmem>>, vector<256x128xbf16>
    tpu.vector_store %arg4[%c0_6, %c0_7], %8 {strides = array<i32>} : memref<256x128xbf16, #tpu.memory_space<vmem>>, vector<256x128xbf16>,
    return
  }
  func.func @transform_0(%arg0: i32) -> (i32, i32) {
    %c0_i32 = arith.constant 0 : i32
    %c0_i32_0 = arith.constant 0 : i32
    return %arg0, %c0_i32 : i32, i32
  }
  func.func @transform_1(%arg0: i32) -> (i32, i32) {
    %c0_i32 = arith.constant 0 : i32
    %c0_i32_0 = arith.constant 0 : i32
    %c0_i32_1 = arith.constant 0 : i32
    return %c0_i32, %c0_i32_0 : i32, i32
  }
  func.func @transform_2(%arg0: i32) -> (i32, i32) {
    %c0_i32 = arith.constant 0 : i32
    %c0_i32_0 = arith.constant 0 : i32
    %c0_i32_1 = arith.constant 0 : i32
    return %c0_i32, %c0_i32_0 : i32, i32
  }
  func.func @transform_3(%arg0: i32) -> (i32, i32) {
    %c0_i32 = arith.constant 0 : i32
    %c0_i32_0 = arith.constant 0 : i32
    return %arg0, %c0_i32 : i32, i32
  }
}

</mosaic_0001>

<bundles_post_ra>
// kernel: tpu_custom_call.1
= control target key start
LH: loop header
LB: loop body
LE: loop exit
PB: predicated region body
PF: predicated region fallthrough
CT: control target
= control target key end

     0   :  { %8 = vsyncpa [#allocation3], 0  ;;  %s1399_s0 = inlined_call_operand.vmem [shape: bf16[512,32], index: 0, kind: input, shape index: {}]   ;;  %s1400_s1 = inlined_call_operand.vmem [shape: bf16[32,128], index: 1, kind: input, shape index: {}]   ;;  %s1401_s2 = inlined_call_operand.vmem [shape: f32[1,128], index: 2, kind: input, shape index: {}]   ;;  %s1402_s3 = inlined_call_operand.hbm [shape: bf16[512,128], index: 3, kind: output, shape index: {}]  }
   0x1   :  { %10 = vsyncpa [#allocation3 + $0x1], 0  ;;  %s1197_s12 = smov 0   ;;  %s1199_s13 = smov 0  }
   0x2   :  { %s1201_s14 = smov 0   ;;  %s1203_s15 = smov 0  }
   0x3 LB: > { %s1218_s16 = sadd.s32 4294967295, %s1172_s15   ;;  %s786_s17 = sadd.s32 4294967294, %s1172_s15   ;;  %s1172_s15 = sphi %s1203_s15, %s1408_s15   ;;  %s1168_s14 = sphi %s1201_s14, %s1407_s14   ;;  %s1164_s13 = sphi %s1199_s13, %s1406_s13   ;;  %s1160_s12 = sphi %s1197_s12, %s1405_s12  }
   0x4   : > { %s1222_s18 = sadd.s32 1, %s1172_s15   ;;  %s91_s19 = sadd.s32 1, %s1168_s14 }
   0x5   : > { %s88_s20 = ssub.s32 %s1172_s15, %s1222_s18  ;;  %p101_p0 = scmp.ne.s32.totalorder %s1168_s14, %s1164_s13 }
   0x6   : > { %p89_p1 = scmp.eq.s32.totalorder %s88_s20, 0  ;;  %p102_p2 = scmp.eq.s32.totalorder %s1218_s16, 1 }
   0x7   : > { %p107_p3 = scmp.ne.s32.totalorder %s1164_s13, %s1160_s12  ;;  %p108_p4 = scmp.eq.s32.totalorder %s786_s17, 1 }
   0x8   : > { %s1233_s21 = scalar_select %p89_p1, %s1168_s14, %s91_s19  }
   0x9   : > { %p1235_p5 = por %p102_p2, %p101_p0  ;;  %p1239_p6 = por %p108_p4, %p107_p3 }
   0xa   : > { %p789_p7 = scmp.ge.s32.totalorder %s1172_s15, 1  ;;  %p141_p8 = scmp.lt.s32.totalorder %s1172_s15, 3 }
   0xc   : > { %p142_p9 = pnand %p789_p7, %p141_p8 }
   0xd   : > { %v1092_v0 = vld [vmem:[%s1400_s1] sm:$0xff] (!%p142_p9)   ;;  %s791_s26 = sshll.u32 (!%p142_p9), %s1218_s16, 5  ;;  %v1093_v1 = vld [vmem:[%s1400_s1 + $0x8] sm:$0xff] (!%p142_p9)   ;;  %vm308_vm0 = vcmask (!%p142_p9), 261120   ;;  %s162_s8 = sand.u32 (!%p142_p9), 1, %s1164_s13  }
   0xe   : > { %145 = sbr.rel (%p142_p9) target bundleno = 287 (0x11f), region = 32  ;;  %p166_p10 = scmp.lt.s32.totalorder (!%p142_p9), %s791_s26, 63  ;;  %1011 = vmatprep.subr.bf16.mxu0 (!%p142_p9), %v1092_v0  ;;  %1047 = vmatprep.subr.bf16.mxu1 (!%p142_p9), %v1092_v0  ;;  %v1292_v18 = vld [vmem:[%s1401_s2] ss:$0 sm:$0xff] (!%p142_p9) }
   0xf   : > { %1012 = vmatpush3.bf16.msra.mxu0 (!%p142_p9), %v1092_v0  ;;  %1049 = vmatpush3.bf16.msra.mxu1 (!%p142_p9), %v1092_v0  ;;  %s790_s9 = sshll.u32 (!%p142_p9), %s162_s8, 7  ;;  %s897_s11 = sshll.u32 (!%p142_p9), %s1218_s16, 11 }
  0x10   : > { %1013 = vmatprep.subr.bf16.mxu0 (!%p142_p9), %v1093_v1  ;;  %1048 = vmatprep.subr.bf16.mxu1 (!%p142_p9), %v1093_v1  ;;  %s1305_s10 = scalar_lea.vmem (!%p142_p9), [#allocation2], %s790_s9  ;;  %s1348_s24 = scalar_lea.hbm (!%p142_p9), %s1402_s3, %s897_s11 }
  0x11   : > { %s724_s17 = sshll.u32 (!%p142_p9), %s1305_s10, 4  ;;  %s1358_s16 = scalar_lea.sflag (!%p142_p9), [#allocation3], %s162_s8  ;;  %s1350_s17 = int_to_ptr.vmem [resolvable:$true] %s724_s17 }
  0x12   : > { %s1110_s25 = scalar_lea.vmem (!%p142_p9), %s1350_s17, 2048 }
  0x13   : > { %1014 = vmatpush3.bf16.msra.mxu0 (!%p142_p9), %v1093_v1  ;;  %1050 = vmatpush3.bf16.msra.mxu1 (!%p142_p9), %v1093_v1  ;;  %p1111_p11 = scmp.ne.s32.totalorder (!%p142_p9), %s1350_s17, %s1110_s25 }
  0x15   : > { %s1410_s26 = smov (!%p166_p10, %s791_s26), 63  ;;  %p1112_p12 = pnand %p1111_p11, %p1235_p5 }
  0x16   : > { %s792_s29 = sshll.u32 %s1410_s26, 2  ;;  %s1174_s26 = smov [#allocation2]  }
  0x17   : > { %s1255_s5 = scalar_lea.vmem %s1399_s0, %s792_s29  ;;  %p1113_p13 = pneg %p1112_p12 }
  0x18   : > { %v1094_v2 = vld [vmem:[%s1255_s5] sm:$0xff]   ;;  %v1096_v4 = vld [vmem:[%s1255_s5 + $0x8] sm:$0xff]   ;;  %v1098_v6 = vld [vmem:[%s1255_s5 + $0x10] sm:$0xff]   ;;  %s1114_s27 = sshll.u32 %s1174_s26, 4  ;;  %s1115_s27 = int_to_ptr.vmem [resolvable:$false] %s1114_s27 }
  0x19   : > { %v1095_v3 = vld [vmem:[%s1255_s5 + $0x40] sm:$0xff]   ;;  %1015 = vmatprep.mubr.msk.bf16.mxu0 %vm308_vm0, %v1094_v2  ;;  %v1097_v5 = vld [vmem:[%s1255_s5 + $0x48] sm:$0xff]   ;;  %v1099_v7 = vld [vmem:[%s1255_s5 + $0x50] sm:$0xff]   ;;  %s1116_s28 = scalar_lea.vmem %s1115_s27, 4096  ;;  %p1117_p0 = scmp.lt.s32.totalorder %s1350_s17, %s1115_s27 }
  0x1a   : > { %1031 = vmatprep.mubr.msk.bf16.mxu1 %vm308_vm0, %v1095_v3  ;;  %1016 = vmatmul.mubr.msk.bf16.vlgmr.msra.gmra.mrb[0].mxu0 %vm308_vm0, %v1096_v4  ;;  %v1100_v8 = vld [vmem:[%s1255_s5 + $0x18] sm:$0xff]   ;;  %v1102_v10 = vld [vmem:[%s1255_s5 + $0x20] sm:$0xff]   ;;  %v1104_v12 = vld [vmem:[%s1255_s5 + $0x28] sm:$0xff]   ;;  %p1118_p1 = scmp.lt.s32.totalorder %s1116_s28, %s1110_s25 }
  0x1b   : > { %1032 = vmatmul.mubr.msk.bf16.vlgmr.msra.gmra.mrb[0].mxu1 %vm308_vm0, %v1097_v5  ;;  %1019 = vmatprep.mubr.msk.bf16.mxu0 %vm308_vm0, %v1098_v6  ;;  %v1101_v9 = vld [vmem:[%s1255_s5 + $0x58] sm:$0xff]   ;;  %v1103_v11 = vld [vmem:[%s1255_s5 + $0x60] sm:$0xff]   ;;  %v1105_v13 = vld [vmem:[%s1255_s5 + $0x68] sm:$0xff]  }
  0x1c   : > { %1035 = vmatprep.mubr.msk.bf16.mxu1 %vm308_vm0, %v1099_v7  ;;  %v1106_v14 = vld [vmem:[%s1255_s5 + $0x30] sm:$0xff]   ;;  %v1108_v16 = vld [vmem:[%s1255_s5 + $0x38] sm:$0xff]   ;;  %p1119_p2 = por %p1118_p1, %p1117_p0 }
  0x1d   : > { %v1107_v15 = vld [vmem:[%s1255_s5 + $0x70] sm:$0xff]   ;;  %v1109_v17 = vld [vmem:[%s1255_s5 + $0x78] sm:$0xff]  }
  0x1e   : > { %p1120_p3 = pnand %p1119_p2, %p1113_p13 }
  0x22   : > { %1020 = vmatmul.mubr.msk.bf16.gmra.mrb[4].mxu0 %vm308_vm0, %v1100_v8 }
  0x23   : > { %1036 = vmatmul.mubr.msk.bf16.gmra.mrb[4].mxu1 %vm308_vm0, %v1101_v9  ;;  %1023 = vmatprep.mubr.msk.bf16.mxu0 %vm308_vm0, %v1102_v10 }
  0x24   : > { %1039 = vmatprep.mubr.msk.bf16.mxu1 %vm308_vm0, %v1103_v11 }
  0x2a   : > { %1024 = vmatmul.mubr.msk.bf16.gmra.mrb[8].mxu0 %vm308_vm0, %v1104_v12 }
  0x2b   : > { %1040 = vmatmul.mubr.msk.bf16.gmra.mrb[8].mxu1 %vm308_vm0, %v1105_v13  ;;  %1027 = vmatprep.mubr.msk.bf16.mxu0 %vm308_vm0, %v1106_v14 }
  0x2c   : > { %1043 = vmatprep.mubr.msk.bf16.mxu1 %vm308_vm0, %v1107_v15 }
  0x32   : > { %1028 = vmatmul.mubr.msk.bf16.gmra.mrb[12].mxu0 %vm308_vm0, %v1108_v16 }
  0x33   : > { %1044 = vmatmul.mubr.msk.bf16.gmra.mrb[12].mxu1 %vm308_vm0, %v1109_v17 }
  0xed   : > { %v1017_v19 = vpop.f32.mrb[0].mxu0 }
  0xee   : > { %v400_v20 = vadd.f32 %v1017_v19, %v1292_v18  ;;  %v1033_v21 = vpop.f32.mrb[0].mxu1  ;;  %v391_v22 = vpop.f32.mrb[1].mxu0 }
  0xef   : > { %v464_v23 = vadd.f32 %v1033_v21, %v1292_v18  ;;  %v392_v24 = vadd.f32 %v1292_v18, %v391_v22  ;;  %v455_v25 = vpop.f32.mrb[1].mxu1  ;;  %v1018_v26 = vpop.f32.mrb[2].mxu0 }
  0xf0   : > { %v456_v27 = vadd.f32 %v1292_v18, %v455_v25  ;;  %v403_v28 = vadd.f32 %v1018_v26, %v1292_v18  ;;  %v1034_v29 = vpop.f32.mrb[2].mxu1  ;;  %v394_v30 = vpop.f32.mrb[3].mxu0  ;;  %v520_v34 = vmax.f32 %v400_v20, 0.0 }
  0xf1   : > { %v467_v31 = vadd.f32 %v1034_v29, %v1292_v18  ;;  %v395_v32 = vadd.f32 %v1292_v18, %v394_v30  ;;  %v458_v33 = vpop.f32.mrb[3].mxu1  ;;  %v536_v37 = vmax.f32 %v464_v23, 0.0  ;;  %v518_v38 = vmax.f32 %v392_v24, 0.0 }
  0xf2   : > { %v521_v35 = vmax.f32 %v403_v28, 0.0  ;;  %v459_v36 = vadd.f32 %v1292_v18, %v458_v33  ;;  %v534_v41 = vmax.f32 %v456_v27, 0.0 }
  0xf3   : > { %v537_v39 = vmax.f32 %v467_v31, 0.0  ;;  %v519_v40 = vmax.f32 %v395_v32, 0.0 }
  0xf4   : > { %v906_v42 = vpack.c.bf16 %v521_v35, %v520_v34  ;;  %v535_v43 = vmax.f32 %v459_v36, 0.0 }
  0xf5   : > { %v946_v44 = vpack.c.bf16 %v537_v39, %v536_v37  ;;  %v901_v45 = vpack.c.bf16 %v519_v40, %v518_v38  ;;  %v1021_v46 = vpop.f32.mrb[4].mxu0 }
  0xf6   : > { %978 = vst [vmem:[%s1305_s10 + $0x8] sm:$0xff] %v906_v42   ;;  %v941_v47 = vpack.c.bf16 %v535_v43, %v534_v41  ;;  %v416_v48 = vadd.f32 %v1021_v46, %v1292_v18  ;;  %v1037_v49 = vpop.f32.mrb[4].mxu1  ;;  %v407_v50 = vpop.f32.mrb[5].mxu0 }
  0xf7   : > { %986 = vst [vmem:[%s1305_s10 + $0x48] sm:$0xff] %v946_v44   ;;  %902 = vst [vmem:[%s1305_s10] sm:$0xff] %v901_v45   ;;  %v480_v51 = vadd.f32 %v1037_v49, %v1292_v18  ;;  %v408_v52 = vadd.f32 %v1292_v18, %v407_v50  ;;  %v471_v53 = vpop.f32.mrb[5].mxu1  ;;  %v1022_v54 = vpop.f32.mrb[6].mxu0 }
  0xf8   : > { %985 = vst [vmem:[%s1305_s10 + $0x40] sm:$0xff] %v941_v47   ;;  %v472_v55 = vadd.f32 %v1292_v18, %v471_v53  ;;  %v419_v56 = vadd.f32 %v1022_v54, %v1292_v18  ;;  %v1038_v57 = vpop.f32.mrb[6].mxu1  ;;  %v410_v58 = vpop.f32.mrb[7].mxu0  ;;  %v524_v62 = vmax.f32 %v416_v48, 0.0 }
  0xf9   : > { %v483_v59 = vadd.f32 %v1038_v57, %v1292_v18  ;;  %v411_v60 = vadd.f32 %v1292_v18, %v410_v58  ;;  %v474_v61 = vpop.f32.mrb[7].mxu1  ;;  %v540_v1 = vmax.f32 %v480_v51, 0.0  ;;  %v522_v2 = vmax.f32 %v408_v52, 0.0 }
  0xfa   : > { %v525_v63 = vmax.f32 %v419_v56, 0.0  ;;  %v475_v0 = vadd.f32 %v1292_v18, %v474_v61  ;;  %v538_v5 = vmax.f32 %v472_v55, 0.0 }
  0xfb   : > { %v541_v3 = vmax.f32 %v483_v59, 0.0  ;;  %v523_v4 = vmax.f32 %v411_v60, 0.0 }
  0xfc   : > { %v916_v6 = vpack.c.bf16 %v525_v63, %v524_v62  ;;  %v539_v7 = vmax.f32 %v475_v0, 0.0 }
  0xfd   : > { %v956_v8 = vpack.c.bf16 %v541_v3, %v540_v1  ;;  %v911_v9 = vpack.c.bf16 %v523_v4, %v522_v2  ;;  %v1025_v10 = vpop.f32.mrb[8].mxu0 }
  0xfe   : > { %980 = vst [vmem:[%s1305_s10 + $0x18] sm:$0xff] %v916_v6   ;;  %v951_v11 = vpack.c.bf16 %v539_v7, %v538_v5  ;;  %v432_v12 = vadd.f32 %v1025_v10, %v1292_v18  ;;  %v1041_v13 = vpop.f32.mrb[8].mxu1  ;;  %v423_v14 = vpop.f32.mrb[9].mxu0 }
  0xff   : > { %988 = vst [vmem:[%s1305_s10 + $0x58] sm:$0xff] %v956_v8   ;;  %979 = vst [vmem:[%s1305_s10 + $0x10] sm:$0xff] %v911_v9   ;;  %v496_v15 = vadd.f32 %v1041_v13, %v1292_v18  ;;  %v424_v16 = vadd.f32 %v1292_v18, %v423_v14  ;;  %v487_v17 = vpop.f32.mrb[9].mxu1  ;;  %v1026_v19 = vpop.f32.mrb[10].mxu0 }
 0x100   : > { %987 = vst [vmem:[%s1305_s10 + $0x50] sm:$0xff] %v951_v11   ;;  %v488_v20 = vadd.f32 %v1292_v18, %v487_v17  ;;  %v435_v21 = vadd.f32 %v1026_v19, %v1292_v18  ;;  %v1042_v22 = vpop.f32.mrb[10].mxu1  ;;  %v426_v23 = vpop.f32.mrb[11].mxu0  ;;  %v528_v27 = vmax.f32 %v432_v12, 0.0 }
 0x101   : > { %v499_v24 = vadd.f32 %v1042_v22, %v1292_v18  ;;  %v427_v25 = vadd.f32 %v1292_v18, %v426_v23  ;;  %v490_v26 = vpop.f32.mrb[11].mxu1  ;;  %v544_v30 = vmax.f32 %v496_v15, 0.0  ;;  %v526_v31 = vmax.f32 %v424_v16, 0.0 }
 0x102   : > { %v529_v28 = vmax.f32 %v435_v21, 0.0  ;;  %v491_v29 = vadd.f32 %v1292_v18, %v490_v26  ;;  %v542_v34 = vmax.f32 %v488_v20, 0.0 }
 0x103   : > { %v545_v32 = vmax.f32 %v499_v24, 0.0  ;;  %v527_v33 = vmax.f32 %v427_v25, 0.0 }
 0x104   : > { %v926_v35 = vpack.c.bf16 %v529_v28, %v528_v27  ;;  %v543_v36 = vmax.f32 %v491_v29, 0.0 }
 0x105   : > { %v966_v37 = vpack.c.bf16 %v545_v32, %v544_v30  ;;  %v921_v38 = vpack.c.bf16 %v527_v33, %v526_v31  ;;  %v1029_v39 = vpop.f32.mrb[12].mxu0 }
 0x106   : > { %982 = vst [vmem:[%s1305_s10 + $0x28] sm:$0xff] %v926_v35   ;;  %v961_v40 = vpack.c.bf16 %v543_v36, %v542_v34  ;;  %v448_v41 = vadd.f32 %v1029_v39, %v1292_v18  ;;  %v1045_v42 = vpop.f32.mrb[12].mxu1  ;;  %v439_v43 = vpop.f32.mrb[13].mxu0 }
 0x107   : > { %990 = vst [vmem:[%s1305_s10 + $0x68] sm:$0xff] %v966_v37   ;;  %981 = vst [vmem:[%s1305_s10 + $0x20] sm:$0xff] %v921_v38   ;;  %v512_v44 = vadd.f32 %v1045_v42, %v1292_v18  ;;  %v440_v45 = vadd.f32 %v1292_v18, %v439_v43  ;;  %v503_v46 = vpop.f32.mrb[13].mxu1  ;;  %v1030_v47 = vpop.f32.mrb[14].mxu0 }
 0x108   : > { %989 = vst [vmem:[%s1305_s10 + $0x60] sm:$0xff] %v961_v40   ;;  %v504_v48 = vadd.f32 %v1292_v18, %v503_v46  ;;  %v451_v49 = vadd.f32 %v1030_v47, %v1292_v18  ;;  %v1046_v50 = vpop.f32.mrb[14].mxu1  ;;  %v442_v51 = vpop.f32.mrb[15].mxu0  ;;  %v532_v55 = vmax.f32 %v448_v41, 0.0 }
 0x109   : > { %v515_v52 = vadd.f32 %v1046_v50, %v1292_v18  ;;  %v443_v53 = vadd.f32 %v1292_v18, %v442_v51  ;;  %v506_v54 = vpop.f32.mrb[15].mxu1  ;;  %v548_v58 = vmax.f32 %v512_v44, 0.0  ;;  %v530_v59 = vmax.f32 %v440_v45, 0.0 }
 0x10a   : > { %v533_v56 = vmax.f32 %v451_v49, 0.0  ;;  %v507_v57 = vadd.f32 %v1292_v18, %v506_v54  ;;  %v546_v62 = vmax.f32 %v504_v48, 0.0 }
 0x10b   : > { %v549_v60 = vmax.f32 %v515_v52, 0.0  ;;  %v531_v61 = vmax.f32 %v443_v53, 0.0 }
 0x10c   : > { %v936_v63 = vpack.c.bf16 %v533_v56, %v532_v55  ;;  %v547_v0 = vmax.f32 %v507_v57, 0.0 }
 0x10d   : > { %v976_v1 = vpack.c.bf16 %v549_v60, %v548_v58  ;;  %v931_v2 = vpack.c.bf16 %v531_v61, %v530_v59 }
 0x10e   : > { %984 = vst [vmem:[%s1305_s10 + $0x38] sm:$0xff] %v936_v63   ;;  %v971_v18 = vpack.c.bf16 %v547_v0, %v546_v62 }
 0x10f   : > { %992 = vst [vmem:[%s1305_s10 + $0x78] sm:$0xff] %v976_v1   ;;  %983 = vst [vmem:[%s1305_s10 + $0x30] sm:$0xff] %v931_v2  }
 0x110   : > { %991 = vst [vmem:[%s1305_s10 + $0x70] sm:$0xff] %v971_v18  }
 0x111   : > { %1123 = shalt.err (!%p1120_p3)
}
 0x112   : > { %s1124_s29 = scalar_lea.hbm %s1348_s24, 2048  ;;  %s1128_s5 = scalar_lea.hbm %s1402_s3, 4096 }
 0x113   : > { %p1125_p4 = scmp.ne.s32.totalorder %s1348_s24, %s1124_s29  ;;  %p1129_p9 = scmp.lt.u32.totalorder %s1348_s24, %s1402_s3 }
 0x114   : > { %p1130_p10 = scmp.lt.u32.totalorder %s1128_s5, %s1124_s29  ;;  %p1132_p12 = scmp.lt.u32.totalorder %s1124_s29, %s1348_s24 }
 0x115   : > { %p1126_p7 = pnand %p1125_p4, %p1235_p5 }
 0x116   : > { %p1131_p11 = por %p1130_p10, %p1129_p9 }
 0x117   : > { %p1127_p8 = pneg %p1126_p7 }
 0x118   : > { %p1133_p13 = por %p1132_p12, %p1131_p11 }
 0x11a   : > { %p1134_p0 = pnand %p1133_p13, %p1127_p8 }
 0x11c   : > { %1137 = shalt.err (!%p1134_p0)
}
 0x11d   : > { %s1175_s8 = smov 64   ;;  %s1176_s9 = smov 4  }
 0x11e   : > { %1051 = dma.vmem_to_hbm [thread:$0]  (%p1235_p5), %s1350_s17, 2048, %s1348_s24, %s1358_s16, %s1175_s8, %s1175_s8, %s1176_s9  }
 0x11f PF: > { %p1057_p1 = scmp.ge.s32.totalorder %s1172_s15, 2  ;;  %s739_s10 = sand.u32 1, %s1160_s12  }
 0x120   : > { %s740_s11 = scalar_lea.sflag [#allocation3], %s739_s10 }
 0x121   : > { %p1054_p2 = pnand %p1057_p1, %p1239_p6 }
 0x123   : > { %1155 = dma.done.wait (!%p1054_p2), %s740_s11, 2048  }
 0x124   : > { %1157 = vsyncadd (!%p1054_p2), %s740_s11, 4294965248  ;;  %p13_p3 = scmp.ge.s32.totalorder %s1222_s18, 4   ;;  %s1405_s12 = smov %s1164_s13 }
 0x125   : > { %s1406_s13 = smov %s1168_s14  ;;  %s1407_s14 = smov %s1233_s21 }
 0x126   : > { %s1408_s15 = smov %s1222_s18  ;;  %15 = sbr.rel (!%p13_p3) target bundleno = 3 (0x3), region = 67 }
 0x12d   :  { %745 = vsyncpa [#allocation3], 1 }
 0x12e   :  { %747 = vsyncpa [#allocation3 + $0x1], 1 }

</bundles_post_ra>
